<compile_context>
chip_gen: v5e
topology: v5e:2x2
jax: 0.10.0
libtpu: 0.0.40
codegen_flags: <defaults>
</compile_context>

<pallas_src>
import math

import jax
import jax.numpy as jnp
from jax.experimental import pallas as pl
from jax.experimental.pallas import tpu as pltpu


def _round_up(n: int, m: int) -> int:
    return ((n + m - 1) // m) * m


def _pad_feature_dim(layer: int) -> int:
    """Smallest divisor of 128 (or multiple of 128) >= layer, for lane density."""
    if layer >= 128:
        return _round_up(layer, 128)
    d = 8
    while d < layer:
        d *= 2
    return d


def _choose_rows_tiling(rows: int, block_rows: int, min_steps: int = 4):
    """Pick (tile, rows_padded) with tile % 8 == 0 and rows_padded % tile == 0.

    Prefers >= min_steps grid steps (>= 2 per TensorCore under v7x megacore
    sharding) and a zero-padding tiling whenever a multiple-of-8 divisor of the
    row count exists near the target tile, so large batches skip jnp.pad.
    """
    rows8 = _round_up(max(rows, 8), 8)
    target = max(8, min(_round_up(block_rows, 8),
                        _round_up(pl.cdiv(rows8, min_steps), 8)))
    tile = target
    while tile >= max(8, target // 2):
        if rows8 % tile == 0:
            return tile, rows8                       # no batch padding needed
        tile -= 8
    # Awkward row count: pad rows up to a multiple of the target tile.
    return target, _round_up(rows8, target)


def _resident_spec(shape):
    """Full-array block with a constant index_map: stays VMEM-resident across
    grid steps.  Single-buffered (pl.Buffered(1)) where supported — constant
    blocks never need double buffering."""
    zeros = (0,) * len(shape)
    index_map = lambda i, _z=zeros: _z
    try:
        return pl.BlockSpec(shape, index_map, pipeline_mode=pl.Buffered(1))
    except (TypeError, AttributeError):   # pipeline_mode unavailable -> default
        return pl.BlockSpec(shape, index_map)


def resblock_stack_kernel(x_ref, w1_ref, b1_ref, w2_ref, b2_ref, o_ref):
    """One batch tile through n_layers sequential ResBlocks.

    x/out cross HBM once; weights are VMEM-resident; all bias / residual /
    accumulation arithmetic is f32 regardless of the I/O or weight dtype.
    """
    n_layers = w1_ref.shape[0]
    x = x_ref[...].astype(jnp.float32)               # [tile, Lp] activation tile
    # Static Python loop (n_layers is small & known at trace time); for deep
    # stacks switch to lax.fori_loop(..., unroll=k) to bound live ranges.
    for l in range(n_layers):
        h = jnp.maximum(x, 0.0)                                          # ReLU (VPU)
        h = jnp.dot(h.astype(w1_ref.dtype), w1_ref[l],
                    preferred_element_type=jnp.float32)                  # Linear1 (MXU)
        h = jnp.maximum(h + b1_ref[l], 0.0)                              # bias + ReLU
        h = jnp.dot(h.astype(w2_ref.dtype), w2_ref[l],
                    preferred_element_type=jnp.float32)                  # Linear2 (MXU)
        x = x + h + b2_ref[l]                                            # bias + residual
    o_ref[...] = x.astype(o_ref.dtype)


def pack_resblock_stack_params(w1s, b1s, w2s, b2s, *, weight_dtype=jnp.float32):
    """One-time parameter prep for a stack of ResBlocks (hoist out of the hot path).

    w1s, w2s: [n_layers, L, L] in PyTorch (out, in) layout; b1s, b2s: [n_layers, L].
    Features are zero-padded to Ld (nearest divisor of 128), then PACK = 128 // Ld
    consecutive batch rows are packed into one 128-wide lane row by replacing W.T
    with the block-diagonal kron(I_PACK, W.T) of shape [Lp, Lp] and tiling the
    bias PACK times.  Elementwise ops (ReLU, bias, residual) stay exact in the
    packed layout.  Use weight_dtype=jnp.bfloat16 on v6e/v7x when precision allows.
    """
    w1s, b1s = jnp.asarray(w1s), jnp.asarray(b1s)
    w2s, b2s = jnp.asarray(w2s), jnp.asarray(b2s)
    if w1s.ndim != 3:
        raise ValueError("expected stacked weights [n_layers, L, L]")
    n_layers, L, _ = w1s.shape
    Ld = _pad_feature_dim(L)
    pack = (128 // Ld) if Ld < 128 else 1
    Lp = pack * Ld
    eye = jnp.eye(pack, dtype=jnp.float32)

    def pack_w(ws):
        wpad = jnp.zeros((n_layers, Ld, Ld), jnp.float32)
        wpad = wpad.at[:, :L, :L].set(ws.astype(jnp.float32))
        packed = jax.vmap(lambda w: jnp.kron(eye, w.T))(wpad)   # [n, Lp, Lp]
        return packed.astype(weight_dtype)

    def pack_b(bs):
        bpad = jnp.zeros((n_layers, Ld), jnp.float32)
        bpad = bpad.at[:, :L].set(bs.astype(jnp.float32))
        return jnp.tile(bpad, (1, pack)).reshape(n_layers, 1, Lp)

    meta = {"pack": pack, "layer": L, "layer_padded": Ld, "n_layers": n_layers}
    return (pack_w(w1s), pack_b(b1s), pack_w(w2s), pack_b(b2s)), meta


def pack_resblock_params(w1, b1, w2, b2, *, weight_dtype=jnp.float32):
    """Single ResBlock (the original module) == a stack of depth 1."""
    return pack_resblock_stack_params(w1[None], b1[None], w2[None], b2[None],
                                      weight_dtype=weight_dtype)


def resblock_stack_forward(x, packed_params, meta, *, block_rows=1024):
    """x: [B, L] (f32 or bf16); packed_params/meta from pack_resblock_stack_params.

    Returns [B, L] in x.dtype.  In real use wrap the surrounding model in
    jax.jit so any pad/reshape/slice fuses and the aliased output reuses x's
    buffer in place.
    """
    w1p, b1p, w2p, b2p = packed_params
    pack, L, Ld = meta["pack"], meta["layer"], meta["layer_padded"]
    Lp = pack * Ld
    B = x.shape[0]
    assert x.shape[1] == L, "feature dim mismatch with packed params"

    rows = pl.cdiv(B, pack)
    tile, rows_p = _choose_rows_tiling(rows, block_rows)
    b_pad = rows_p * pack
    row_pad, col_pad = b_pad - B, Ld - L
    if row_pad or col_pad:
        # Only hit for tiny/awkward batches or non-divisor feature widths; the
        # tiling chooser above keeps typical large batches pad-free (no copy).
        x = jnp.pad(x, ((0, row_pad), (0, col_pad)))
    xp = x.reshape(rows_p, Lp)                       # row-major metadata reshape

    grid = (rows_p // tile,)
    grid_spec = pl.GridSpec(
        grid=grid,
        in_specs=[
            pl.BlockSpec((tile, Lp), lambda i: (i, 0)),   # x tile (pipelined)
            _resident_spec(w1p.shape),                    # stacked kron(I, W1^T)
            _resident_spec(b1p.shape),                    # stacked packed b1
            _resident_spec(w2p.shape),                    # stacked kron(I, W2^T)
            _resident_spec(b2p.shape),                    # stacked packed b2
        ],
        out_specs=pl.BlockSpec((tile, Lp), lambda i: (i, 0)),
    )
    out_p = pl.pallas_call(
        resblock_stack_kernel,
        out_shape=jax.ShapeDtypeStruct((rows_p, Lp), x.dtype),
        grid_spec=grid_spec,
        input_output_aliases={0: 0},                  # write residual in place over xp
        compiler_params=pltpu.CompilerParams(
            dimension_semantics=("parallel",)),       # megacore sharding on v7x
    )(xp, w1p, b1p, w2p, b2p)

    out = out_p.reshape(b_pad, Ld)
    if row_pad or col_pad:
        out = out[:B, :L]
    return out


def resblock_forward(x, packed_params, meta, *, block_rows=1024):
    """Single ResBlock forward, matching the PyTorch module."""
    return resblock_stack_forward(x, packed_params, meta, block_rows=block_rows)


def resblock_ref(x, w1, b1, w2, b2):
    # Pure-JAX reference: nn.Sequential(ReLU, Linear, ReLU, Linear) + residual.
    h = jax.nn.relu(x)
    h = h @ w1.T + b1
    h = jax.nn.relu(h)
    h = h @ w2.T + b2
    return x + h


def resblock_stack_ref(x, w1s, b1s, w2s, b2s):
    for w1, b1, w2, b2 in zip(w1s, b1s, w2s, b2s):
        x = resblock_ref(x, w1, b1, w2, b2)
    return x


if __name__ == "__main__":
    layer = 32   # feature width of the ResBlock
    batch = 8

    key = jax.random.PRNGKey(0)
    kx, kw1, kb1, kw2, kb2, kstack = jax.random.split(key, 6)

    # Deterministic init mimicking nn.Linear: U(-1/sqrt(in), 1/sqrt(in)).
    bound = 1.0 / math.sqrt(layer)
    x = jax.random.normal(kx, (batch, layer), dtype=jnp.float32)
    w1 = jax.random.uniform(kw1, (layer, layer), jnp.float32, -bound, bound)
    b1 = jax.random.uniform(kb1, (layer,), jnp.float32, -bound, bound)
    w2 = jax.random.uniform(kw2, (layer, layer), jnp.float32, -bound, bound)
    b2 = jax.random.uniform(kb2, (layer,), jnp.float32, -bound, bound)

    # --- single ResBlock (the original module), f32, tiny batch --------------
    params, meta = pack_resblock_params(w1, b1, w2, b2)
    ref_small = resblock_ref(x, w1, b1, w2, b2)            # refs computed first
    out = jax.block_until_ready(resblock_forward(x, params, meta))
    assert out.shape == (batch, layer)
    assert jnp.allclose(out, ref_small, atol=1e-5, rtol=1e-5), "f32 mismatch"

    # --- big batch: >= 4 grid steps (>= 2 per TC on v7x), zero padding -------
    big = 4096
    xb = jax.random.normal(jax.random.PRNGKey(1), (big, layer), jnp.float32)
    ref_big = resblock_ref(xb, w1, b1, w2, b2)
    out_big = jax.block_until_ready(resblock_forward(xb, params, meta))
    assert jnp.allclose(out_big, ref_big, atol=1e-4, rtol=1e-4), "big-batch mismatch"

    # --- fused 3-layer ResBlock stack: one pallas_call, x/out cross HBM once -
    n_layers = 3
    ks = jax.random.split(kstack, 4)
    w1s = jax.random.uniform(ks[0], (n_layers, layer, layer), jnp.float32, -bound, bound)
    b1s = jax.random.uniform(ks[1], (n_layers, layer), jnp.float32, -bound, bound)
    w2s = jax.random.uniform(ks[2], (n_layers, layer, layer), jnp.float32, -bound, bound)
    b2s = jax.random.uniform(ks[3], (n_layers, layer), jnp.float32, -bound, bound)
    stack_params, stack_meta = pack_resblock_stack_params(w1s, b1s, w2s, b2s)
    ref_stack = resblock_stack_ref(xb, w1s, b1s, w2s, b2s)
    out_stack = jax.block_until_ready(
        resblock_stack_forward(xb, stack_params, stack_meta))
    assert jnp.allclose(out_stack, ref_stack, atol=1e-4, rtol=1e-4), "stack mismatch"

    # --- bf16 activations + bf16 weights: halves x/out HBM bytes -------------
    params_bf16, meta_bf16 = pack_resblock_params(
        w1, b1, w2, b2, weight_dtype=jnp.bfloat16)
    xb_bf16 = xb.astype(jnp.bfloat16)                      # test-harness cast only
    ref_bf16 = resblock_ref(xb_bf16.astype(jnp.float32), w1, b1, w2, b2)
    out_bf16 = jax.block_until_ready(
        resblock_forward(xb_bf16, params_bf16, meta_bf16))
    assert out_bf16.dtype == jnp.bfloat16
    assert jnp.allclose(out_bf16.astype(jnp.float32), ref_bf16,
                        atol=5e-2, rtol=5e-2), "bf16 mismatch"

    # --- feature width not dividing 128 (L=24 -> zero-padded to 32 lanes) ----
    layer_odd = 24
    bound_o = 1.0 / math.sqrt(layer_odd)
    ko = jax.random.split(jax.random.PRNGKey(2), 5)
    xo = jax.random.normal(ko[0], (16, layer_odd), jnp.float32)
    w1o = jax.random.uniform(ko[1], (layer_odd, layer_odd), jnp.float32, -bound_o, bound_o)
    b1o = jax.random.uniform(ko[2], (layer_odd,), jnp.float32, -bound_o, bound_o)
    w2o = jax.random.uniform(ko[3], (layer_odd, layer_odd), jnp.float32, -bound_o, bound_o)
    b2o = jax.random.uniform(ko[4], (layer_odd,), jnp.float32, -bound_o, bound_o)
    params_o, meta_o = pack_resblock_params(w1o, b1o, w2o, b2o)
    ref_o = resblock_ref(xo, w1o, b1o, w2o, b2o)
    out_o = jax.block_until_ready(resblock_forward(xo, params_o, meta_o))
    assert jnp.allclose(out_o, ref_o, atol=1e-5, rtol=1e-5), "padded-feature mismatch"

    print("KERNEL_OK")
</pallas_src>

<mosaic_0001>
module attributes {stable_mosaic.version = 11 : i64} {
  func.func @resblock_stack_kernel(%arg0: i32, %arg1: memref<8x128xf32, #tpu.memory_space<vmem>>, %arg2: memref<1x128x128xf32, #tpu.memory_space<vmem>>, %arg3: memref<1x1x128xf32, #tpu.memory_space<vmem>>, %arg4: memref<1x128x128xf32, #tpu.memory_space<vmem>>, %arg5: memref<1x1x128xf32, #tpu.memory_space<vmem>>, %arg6: memref<8x128xf32, #tpu.memory_space<vmem>>) attributes {dimension_semantics = [#tpu.dimension_semantics<parallel>], iteration_bounds = array<i64: 1>, scalar_prefetch = 0 : i64, scratch_operands = 0 : i64, tpu.core_type = #tpu.core_type<tc>, window_params = [{transform_indices = @transform_0, window_bounds = array<i64: 8, 128>}, {pipeline_mode = #tpu.pipeline_mode<synchronous>, transform_indices = @transform_1, window_bounds = array<i64: 1, 128, 128>}, {pipeline_mode = #tpu.pipeline_mode<synchronous>, transform_indices = @transform_2, window_bounds = array<i64: 1, 1, 128>}, {pipeline_mode = #tpu.pipeline_mode<synchronous>, transform_indices = @transform_3, window_bounds = array<i64: 1, 128, 128>}, {pipeline_mode = #tpu.pipeline_mode<synchronous>, transform_indices = @transform_4, window_bounds = array<i64: 1, 1, 128>}, {transform_indices = @transform_5, window_bounds = array<i64: 8, 128>}]} {
    %c0 = arith.constant 0 : index
    %c0_0 = arith.constant 0 : index
    %0 = vector.load %arg1[%c0, %c0_0] : memref<8x128xf32, #tpu.memory_space<vmem>>, vector<8x128xf32>
    %cst = arith.constant 0.000000e+00 : f32
    %1 = vector.broadcast %cst : f32 to vector<8x128xf32>
    %2 = arith.maximumf %0, %1 : vector<8x128xf32>
    %c0_1 = arith.constant 0 : index
    %c0_2 = arith.constant 0 : index
    %c0_3 = arith.constant 0 : index
    %3 = vector.load %arg2[%c0_1, %c0_2, %c0_3] : memref<1x128x128xf32, #tpu.memory_space<vmem>>, vector<1x128x128xf32>
    %4 = vector.shape_cast %3 : vector<1x128x128xf32> to vector<128x128xf32>
    %cst_4 = arith.constant dense<0.000000e+00> : vector<8x128xf32>
    %5 = tpu.matmul %2, %4, %cst_4 {dimension_numbers = #tpu.dot_dimension_numbers<[1], [0], [0], [1], [0, 0, 1, 1], [], []>} : vector<8x128xf32>, vector<128x128xf32>, vector<8x128xf32> -> vector<8x128xf32>
    %c0_5 = arith.constant 0 : index
    %c0_6 = arith.constant 0 : index
    %c0_7 = arith.constant 0 : index
    %6 = vector.load %arg3[%c0_5, %c0_6, %c0_7] : memref<1x1x128xf32, #tpu.memory_space<vmem>>, vector<1x1x128xf32>
    %7 = vector.shape_cast %6 : vector<1x1x128xf32> to vector<1x128xf32>
    %8 = vector.broadcast %7 : vector<1x128xf32> to vector<8x128xf32>
    %9 = arith.addf %5, %8 : vector<8x128xf32>
    %cst_8 = arith.constant 0.000000e+00 : f32
    %10 = vector.broadcast %cst_8 : f32 to vector<8x128xf32>
    %11 = arith.maximumf %9, %10 : vector<8x128xf32>
    %c0_9 = arith.constant 0 : index
    %c0_10 = arith.constant 0 : index
    %c0_11 = arith.constant 0 : index
    %12 = vector.load %arg4[%c0_9, %c0_10, %c0_11] : memref<1x128x128xf32, #tpu.memory_space<vmem>>, vector<1x128x128xf32>
    %13 = vector.shape_cast %12 : vector<1x128x128xf32> to vector<128x128xf32>
    %cst_12 = arith.constant dense<0.000000e+00> : vector<8x128xf32>
    %14 = tpu.matmul %11, %13, %cst_12 {dimension_numbers = #tpu.dot_dimension_numbers<[1], [0], [0], [1], [0, 0, 1, 1], [], []>} : vector<8x128xf32>, vector<128x128xf32>, vector<8x128xf32> -> vector<8x128xf32>
    %15 = arith.addf %0, %14 : vector<8x128xf32>
    %c0_13 = arith.constant 0 : index
    %c0_14 = arith.constant 0 : index
    %c0_15 = arith.constant 0 : index
    %16 = vector.load %arg5[%c0_13, %c0_14, %c0_15] : memref<1x1x128xf32, #tpu.memory_space<vmem>>, vector<1x1x128xf32>
    %17 = vector.shape_cast %16 : vector<1x1x128xf32> to vector<1x128xf32>
    %18 = vector.broadcast %17 : vector<1x128xf32> to vector<8x128xf32>
    %19 = arith.addf %15, %18 : vector<8x128xf32>
    %c0_16 = arith.constant 0 : index
    %c0_17 = arith.constant 0 : index
    %20 = vector.load %arg6[%c0_16, %c0_17] : memref<8x128xf32, #tpu.memory_space<vmem>>, vector<8x128xf32>
    tpu.vector_store %arg6[%c0_16, %c0_17], %19 {strides = array<i32>} : memref<8x128xf32, #tpu.memory_space<vmem>>, vector<8x128xf32>,
    return
  }
  func.func @transform_0(%arg0: i32) -> (i32, i32) {
    %c0_i32 = arith.constant 0 : i32
    %c0_i32_0 = arith.constant 0 : i32
    return %arg0, %c0_i32 : i32, i32
  }
  func.func @transform_1(%arg0: i32) -> (i32, i32, i32) {
    %c0_i32 = arith.constant 0 : i32
    %c0_i32_0 = arith.constant 0 : i32
    %c0_i32_1 = arith.constant 0 : i32
    %c0_i32_2 = arith.constant 0 : i32
    return %c0_i32, %c0_i32_0, %c0_i32_1 : i32, i32, i32
  }
  func.func @transform_2(%arg0: i32) -> (i32, i32, i32) {
    %c0_i32 = arith.constant 0 : i32
    %c0_i32_0 = arith.constant 0 : i32
    %c0_i32_1 = arith.constant 0 : i32
    %c0_i32_2 = arith.constant 0 : i32
    return %c0_i32, %c0_i32_0, %c0_i32_1 : i32, i32, i32
  }
  func.func @transform_3(%arg0: i32) -> (i32, i32, i32) {
    %c0_i32 = arith.constant 0 : i32
    %c0_i32_0 = arith.constant 0 : i32
    %c0_i32_1 = arith.constant 0 : i32
    %c0_i32_2 = arith.constant 0 : i32
    return %c0_i32, %c0_i32_0, %c0_i32_1 : i32, i32, i32
  }
  func.func @transform_4(%arg0: i32) -> (i32, i32, i32) {
    %c0_i32 = arith.constant 0 : i32
    %c0_i32_0 = arith.constant 0 : i32
    %c0_i32_1 = arith.constant 0 : i32
    %c0_i32_2 = arith.constant 0 : i32
    return %c0_i32, %c0_i32_0, %c0_i32_1 : i32, i32, i32
  }
  func.func @transform_5(%arg0: i32) -> (i32, i32) {
    %c0_i32 = arith.constant 0 : i32
    %c0_i32_0 = arith.constant 0 : i32
    return %arg0, %c0_i32 : i32, i32
  }
}

</mosaic_0001>

<bundles_post_ra>
// kernel: tpu_custom_call.1
= control target key start
LH: loop header
LB: loop body
LE: loop exit
PB: predicated region body
PF: predicated region fallthrough
CT: control target
= control target key end

     0   :  { %10 = vsyncpa [#allocation3], 0  ;;  %s334_s0 = inlined_call_operand.hbm [shape: f32[8,128], index: 0, kind: input, shape index: {}, may-alias: {0,5}]   ;;  %s335_s1 = inlined_call_operand.hbm [shape: f32[1,128,128], index: 1, kind: input, shape index: {}]   ;;  %s336_s2 = inlined_call_operand.vmem [shape: f32[1,1,128], index: 2, kind: input, shape index: {}]   ;;  %s337_s3 = inlined_call_operand.hbm [shape: f32[1,128,128], index: 3, kind: input, shape index: {}]   ;;  %s338_s4 = inlined_call_operand.vmem [shape: f32[1,1,128], index: 4, kind: input, shape index: {}]   ;;  %s339_s5 = inlined_call_operand.hbm [shape: f32[8,128], index: 5, kind: output, shape index: {}, may-alias: {0,5}]  }
   0x1   :  { %11 = vsyncpa [#allocation6], 0  ;;  %s28_s20 = sshll.u32 %s335_s1, 4  ;;  %s29_s20 = int_to_ptr.hbm [resolvable:$true] %s28_s20 }
   0x2   :  { %12 = vsyncpa [#allocation4], 0  ;;  %s280_s21 = smov [#allocation5]   ;;  %s18_s25 = sshll.u32 %s334_s0, 4  ;;  %s19_s25 = int_to_ptr.hbm [resolvable:$true] %s18_s25 }
   0x3   :  { %s30_s22 = sshll.u32 %s280_s21, 4  ;;  %s281_s26 = smov 128   ;;  %s31_s22 = int_to_ptr.vmem [resolvable:$true] %s30_s22 }
   0x4   :  { %s282_s27 = smov 8   ;;  %s283_s28 = smov [#allocation2]  }
   0x5   :  { %36 = dma.hbm_to_vmem [thread:$0]  %s29_s20, 2048, %s31_s22, [#allocation6], %s281_s26, %s281_s26, %s282_s27  }
   0x6   :  { %s20_s29 = sshll.u32 %s283_s28, 4  ;;  %s43_s7 = sshll.u32 %s337_s3, 4  ;;  %s21_s29 = int_to_ptr.vmem [resolvable:$true] %s20_s29  ;;  %s44_s7 = int_to_ptr.hbm [resolvable:$true] %s43_s7 }
   0x7   :  { %23 = dma.hbm_to_vmem [thread:$0]  %s19_s25, 128, %s21_s29, [#allocation3]  }
   0x8   :  { %s284_s1 = smov [#allocation7]  }
   0x9   :  { %s45_s8 = sshll.u32 %s284_s1, 4  ;;  %s46_s8 = int_to_ptr.vmem [resolvable:$true] %s45_s8 }
   0xa   :  { %51 = dma.hbm_to_vmem [thread:$0]  %s44_s7, 2048, %s46_s8, [#allocation6], %s281_s26, %s281_s26, %s282_s27  }
   0xb   :  { %274 = dma.done.wait [#allocation3], 128  }
   0xc   :  { %275 = vsyncadd [#allocation3], 4294967168 }
   0xd   :  { %276 = dma.done.wait [#allocation6], 4096  }
   0xe   :  { %277 = vsyncadd [#allocation6], 4294963200  ;;  %v83_v0 = vld [vmem:[#allocation5 + $0x78] sm:$0xff]  ;;  %v82_v1 = vld [vmem:[#allocation5 + $0x70] sm:$0xff]  ;;  %s285_s11 = smov [#allocation8]   ;;  %s159_s15 = sshll.u32 %s339_s5, 4  ;;  %s160_s15 = int_to_ptr.hbm [resolvable:$true] %s159_s15 }
   0xf   :  { %88 = vmatpush.msra.mxu0 %v83_v0  ;;  %v81_v2 = vld [vmem:[#allocation5 + $0x68] sm:$0xff]  ;;  %v80_v3 = vld [vmem:[#allocation5 + $0x60] sm:$0xff]  ;;  %v124_v4 = vld [vmem:[#allocation7 + $0x78] sm:$0xff]  ;;  %s157_s12 = sshll.u32 %s285_s11, 4  ;;  %s158_s12 = int_to_ptr.vmem [resolvable:$true] %s157_s12 }
  0x10   :  { %v79_v5 = vld [vmem:[#allocation5 + $0x58] sm:$0xff]  ;;  %125 = vmatpush.msra.mxu1 %v124_v4  ;;  %v123_v6 = vld [vmem:[#allocation7 + $0x70] sm:$0xff]  ;;  %v122_v7 = vld [vmem:[#allocation7 + $0x68] sm:$0xff] }
  0x11   :  { %89 = vmatpush.msra.mxu0 %v82_v1  ;;  %v78_v8 = vld [vmem:[#allocation5 + $0x50] sm:$0xff]  ;;  %v121_v9 = vld [vmem:[#allocation7 + $0x60] sm:$0xff]  ;;  %v77_v10 = vld [vmem:[#allocation5 + $0x48] sm:$0xff] }
  0x12   :  { %126 = vmatpush.msra.mxu1 %v123_v6  ;;  %v120_v11 = vld [vmem:[#allocation7 + $0x58] sm:$0xff]  ;;  %v76_v12 = vld [vmem:[#allocation5 + $0x40] sm:$0xff]  ;;  %v119_v13 = vld [vmem:[#allocation7 + $0x50] sm:$0xff] }
  0x13   :  { %90 = vmatpush.msra.mxu0 %v81_v2  ;;  %v75_v14 = vld [vmem:[#allocation5 + $0x38] sm:$0xff]  ;;  %v118_v15 = vld [vmem:[#allocation7 + $0x48] sm:$0xff]  ;;  %v74_v16 = vld [vmem:[#allocation5 + $0x30] sm:$0xff] }
  0x14   :  { %127 = vmatpush.msra.mxu1 %v122_v7  ;;  %v117_v17 = vld [vmem:[#allocation7 + $0x40] sm:$0xff]  ;;  %v73_v18 = vld [vmem:[#allocation5 + $0x28] sm:$0xff]  ;;  %v116_v19 = vld [vmem:[#allocation7 + $0x38] sm:$0xff] }
  0x15   :  { %91 = vmatpush.msra.mxu0 %v80_v3  ;;  %v72_v20 = vld [vmem:[#allocation5 + $0x20] sm:$0xff]  ;;  %v115_v21 = vld [vmem:[#allocation7 + $0x30] sm:$0xff]  ;;  %v71_v22 = vld [vmem:[#allocation5 + $0x18] sm:$0xff] }
  0x16   :  { %128 = vmatpush.msra.mxu1 %v121_v9  ;;  %v114_v23 = vld [vmem:[#allocation7 + $0x28] sm:$0xff]  ;;  %v70_v24 = vld [vmem:[#allocation5 + $0x10] sm:$0xff]  ;;  %v66_v25 = vld [vmem:[#allocation2] sm:$0xff] }
  0x17   :  { %92 = vmatpush.msra.mxu0 %v79_v5  ;;  %v113_v26 = vld [vmem:[#allocation7 + $0x20] sm:$0xff]  ;;  %v69_v27 = vld [vmem:[#allocation5 + $0x8] sm:$0xff]  ;;  %v112_v28 = vld [vmem:[#allocation7 + $0x18] sm:$0xff]  ;;  %v67_v30 = vmax.f32 %v66_v25, 0.0 }
  0x18   :  { %129 = vmatpush.msra.mxu1 %v120_v11  ;;  %v68_v29 = vld [vmem:[#allocation5] sm:$0xff]  ;;  %v111_v31 = vld [vmem:[#allocation7 + $0x10] sm:$0xff]  ;;  %v110_v32 = vld [vmem:[#allocation7 + $0x8] sm:$0xff] }
  0x19   :  { %93 = vmatpush.msra.mxu0 %v78_v8  ;;  %v109_v33 = vld [vmem:[#allocation7] sm:$0xff]  ;;  %v176_v34 = vld [vmem:[%s336_s2] ss:$0 sm:$0xff] }
  0x1a   :  { %130 = vmatpush.msra.mxu1 %v119_v13  ;;  %v177_v38 = vld [vmem:[%s338_s4] ss:$0 sm:$0xff] }
  0x1b   :  { %94 = vmatpush.msra.mxu0 %v77_v10 }
  0x1c   :  { %131 = vmatpush.msra.mxu1 %v118_v15 }
  0x1d   :  { %95 = vmatpush.msra.mxu0 %v76_v12 }
  0x1e   :  { %132 = vmatpush.msra.mxu1 %v117_v17 }
  0x1f   :  { %96 = vmatpush.msra.mxu0 %v75_v14 }
  0x20   :  { %133 = vmatpush.msra.mxu1 %v116_v19 }
  0x21   :  { %97 = vmatpush.msra.mxu0 %v74_v16 }
  0x22   :  { %134 = vmatpush.msra.mxu1 %v115_v21 }
  0x23   :  { %98 = vmatpush.msra.mxu0 %v73_v18 }
  0x24   :  { %135 = vmatpush.msra.mxu1 %v114_v23 }
  0x25   :  { %99 = vmatpush.msra.mxu0 %v72_v20 }
  0x26   :  { %136 = vmatpush.msra.mxu1 %v113_v26 }
  0x27   :  { %100 = vmatpush.msra.mxu0 %v71_v22 }
  0x28   :  { %137 = vmatpush.msra.mxu1 %v112_v28 }
  0x29   :  { %101 = vmatpush.msra.mxu0 %v70_v24 }
  0x2a   :  { %138 = vmatpush.msra.mxu1 %v111_v31 }
  0x2b   :  { %102 = vmatpush.msra.mxu0 %v69_v27 }
  0x2c   :  { %139 = vmatpush.msra.mxu1 %v110_v32 }
  0x2d   :  { %103 = vmatpush.msra.mxu0 %v68_v29 }
  0x2e   :  { %104 = vmatmul.f32.vlgmr.msra.gmra.mxu0 %v67_v30  ;;  %140 = vmatpush.msra.mxu1 %v109_v33 }
  0xab   :  { %v105_v35 = vpop.f32.mrf.mxu0 }
  0xac   :  { %v106_v36 = vadd.f32 %v176_v34, %v105_v35 }
  0xae   :  { %v108_v37 = vmax.f32 %v106_v36, 0.0 }
  0xb0   :  { %141 = vmatmul.f32.vlgmr.msra.gmra.mxu1 %v108_v37 }
 0x12d   :  { %v142_v39 = vpop.f32.mrf.mxu1 }
 0x12e   :  { %v145_v40 = vadd.f32 %v142_v39, %v66_v25 }
 0x130   :  { %v150_v41 = vadd.f32 %v177_v38, %v145_v40 }
 0x132   :  { %151 = vst [vmem:[#allocation8] sm:$0xff] %v150_v41 }
 0x133   :  { %162 = dma.vmem_to_hbm [thread:$0]  %s158_s12, 128, %s160_s15, [#allocation4]  }
 0x134   :  { %278 = dma.done.wait [#allocation4], 128  }
 0x135   :  { %279 = vsyncadd [#allocation4], 4294967168 }
 0x136   :  { %167 = vsyncpa [#allocation3], 1 }
 0x137   :  { %168 = vsyncpa [#allocation6], 1 }
 0x138   :  { %169 = vsyncpa [#allocation4], 1 }

</bundles_post_ra>
